<compile_context>
chip_gen: v7x
topology: tpu7x:2x2x1
jax: 0.10.0
libtpu: 0.0.40
codegen_flags: <defaults>
</compile_context>

<pallas_src>
import functools
import math

import jax
import jax.numpy as jnp
from jax import lax
from jax.experimental import pallas as pl
from jax.experimental.pallas import tpu as pltpu

EPS = 1e-8          # matches nn.CosineSimilarity default eps
_LANE = 128
_SUBLANE = 8


def _ceil_div(a, b):
    return -(-a // b)


def _round_up(a, m):
    return _ceil_div(a, m) * m


def _cosine_kernel(x_ref, y_ref, o_ref, dot_acc, xx_acc, yy_acc, *, temp, eps):
    # x_ref / y_ref: (bb, bd) tile.  o_ref: (1, 1, bb).  Scratch accs: (1, bb) f32.
    k = pl.program_id(1)

    @pl.when(k == 0)
    def _init():
        dot_acc[...] = jnp.zeros_like(dot_acc)
        xx_acc[...] = jnp.zeros_like(xx_acc)
        yy_acc[...] = jnp.zeros_like(yy_acc)

    x = x_ref[...].astype(jnp.float32)
    y = y_ref[...].astype(jnp.float32)

    # Row reductions as ones(1, bd) . tile(bb, bd)^T -> (1, bb): results are
    # lane-dense, so no relayout / masked 1-lane stores are needed anywhere,
    # and the reduction work moves onto the otherwise idle MXU.
    ones = jnp.ones((1, x.shape[-1]), jnp.float32)
    mm = functools.partial(
        lax.dot_general,
        dimension_numbers=(((1,), (1,)), ((), ())),    # contract last dims
        preferred_element_type=jnp.float32,
        precision=lax.Precision.HIGHEST,               # keep f32 fidelity
    )
    dot_acc[...] += mm(ones, x * y)
    xx_acc[...] += mm(ones, x * x)
    yy_acc[...] += mm(ones, y * y)

    @pl.when(k == pl.num_programs(1) - 1)
    def _finalize():
        norm = jnp.sqrt(xx_acc[...]) * jnp.sqrt(yy_acc[...])
        scale = pl.reciprocal(jnp.maximum(norm, eps) * temp, approx=False)
        o_ref[0] = (dot_acc[...] * scale).astype(o_ref.dtype)


def _choose_blocks(B, D, itemsize, block_b, block_d):
    """Pick (block_b, n_b, block_d, n_d) under a ~4 MiB-per-input-tile budget."""
    max_block_d = 2048                 # lanes per feature tile
    target_tile_bytes = 4 * 1024 * 1024

    if block_d is None:
        if D <= max_block_d:
            block_d = D                # single k step; full-dim block, any D ok
        else:
            n_d = _ceil_div(D, max_block_d)
            block_d = _round_up(_ceil_div(D, n_d), _LANE)
    n_d = _ceil_div(D, block_d)
    if n_d > 1 and block_d % _LANE:
        raise ValueError("block_d must be a multiple of 128 when it tiles D")

    if block_b is None:
        rows = (target_tile_bytes // max(1, block_d * itemsize)) // _SUBLANE * _SUBLANE
        rows = max(_SUBLANE, min(rows, 1024))
        if B <= rows:
            block_b = B                # single batch tile; full-dim block
        else:
            n_b = _ceil_div(B, rows)
            block_b = _round_up(_ceil_div(B, n_b), _SUBLANE)
    n_b = _ceil_div(B, block_b)
    if n_b > 1 and block_b % _SUBLANE:
        raise ValueError("block_b must be a multiple of 8 when it tiles B")
    return block_b, n_b, block_d, n_d


def similarity(x, y, temp, *, block_b=None, block_d=None):
    """cosine_similarity(x, y, dim=-1) / temp.  Returns float32 of shape x.shape[:-1]."""
    assert x.shape == y.shape, "x and y must have the same shape"
    lead = x.shape[:-1]
    D = x.shape[-1]
    B = int(math.prod(lead))
    xr = x.reshape(B, D)
    yr = y.reshape(B, D)

    itemsize = jnp.dtype(x.dtype).itemsize
    bb, n_b, bd, n_d = _choose_blocks(B, D, itemsize, block_b, block_d)

    Bp, Dp = n_b * bb, n_d * bd
    if Bp != B or Dp != D:
        # Zero padding is exact: padded entries add 0 to every partial sum and
        # padded rows are sliced away below.
        xr = jnp.pad(xr, ((0, Bp - B), (0, Dp - D)))
        yr = jnp.pad(yr, ((0, Bp - B), (0, Dp - D)))

    # 2 inputs x 2 pipeline buffers of (bb, bd) + small output / accumulators.
    tile_bytes = bb * bd * itemsize
    vmem_limit = int(min(max(32 * 1024 * 1024, 6 * tile_bytes),
                         64 * 1024 * 1024))            # stay under v7x's 64 MiB

    kernel = functools.partial(_cosine_kernel, temp=float(temp), eps=EPS)
    out = pl.pallas_call(
        kernel,
        out_shape=jax.ShapeDtypeStruct((n_b, 1, bb), jnp.float32),
        grid_spec=pltpu.PrefetchScalarGridSpec(
            num_scalar_prefetch=0,
            grid=(n_b, n_d),                           # reduction axis last
            in_specs=[
                pl.BlockSpec((bb, bd), lambda i, k: (i, k)),
                pl.BlockSpec((bb, bd), lambda i, k: (i, k)),
            ],
            out_specs=pl.BlockSpec((1, 1, bb), lambda i, k: (i, 0, 0)),
            scratch_shapes=[pltpu.VMEM((1, bb), jnp.float32) for _ in range(3)],
        ),
        compiler_params=pltpu.CompilerParams(
            dimension_semantics=("parallel", "arbitrary"),
            vmem_limit_bytes=vmem_limit,
        ),
    )(xr, yr)

    return out.reshape(-1)[:B].reshape(lead)


def similarity_ref(x, y, temp):
    x = x.astype(jnp.float32)
    y = y.astype(jnp.float32)
    dot = jnp.sum(x * y, axis=-1)
    nx = jnp.sqrt(jnp.sum(x * x, axis=-1))
    ny = jnp.sqrt(jnp.sum(y * y, axis=-1))
    return dot / jnp.maximum(nx * ny, EPS) / temp


if __name__ == "__main__":
    temp = 0.05   # module "parameter" (temperature), set deterministically
    key = jax.random.PRNGKey(0)
    k1, k2, k3, k4 = jax.random.split(key, 4)

    # Case 1: small single-tile path (batch=8, hidden=32).
    x1 = jax.random.normal(k1, (8, 32), jnp.float32)
    y1 = jax.random.normal(k2, (8, 32), jnp.float32)
    out1 = jax.block_until_ready(similarity(x1, y1, temp))
    ref1 = similarity_ref(x1, y1, temp)
    assert out1.shape == (8,)
    assert jnp.allclose(out1, ref1, atol=5e-3, rtol=5e-3), (out1, ref1)

    # Case 2: 3-D inputs; exercises batch tiling (+padding 20 -> 24 rows) and
    # the feature-axis accumulator path (256 = 2 x 128-wide k steps).
    x2 = jax.random.normal(k3, (4, 5, 256), jnp.float32)
    y2 = jax.random.normal(k4, (4, 5, 256), jnp.float32)
    out2 = jax.block_until_ready(similarity(x2, y2, temp, block_b=8, block_d=128))
    ref2 = similarity_ref(x2, y2, temp)
    assert out2.shape == (4, 5)
    assert jnp.allclose(out2, ref2, atol=5e-3, rtol=5e-3), (out2, ref2)

    # Case 3: bf16 inputs (halves HBM traffic); accumulation stays f32 in-kernel.
    out3 = jax.block_until_ready(
        similarity(x1.astype(jnp.bfloat16), y1.astype(jnp.bfloat16), temp))
    ref3 = similarity_ref(x1.astype(jnp.bfloat16), y1.astype(jnp.bfloat16), temp)
    assert jnp.allclose(out3, ref3, atol=5e-3, rtol=5e-3), (out3, ref3)

    print("KERNEL_OK")
</pallas_src>

<mosaic_0001>
module attributes {stable_mosaic.version = 11 : i64} {
  func.func @_cosine_kernel(%arg0: i32, %arg1: i32, %arg2: memref<8x32xf32, #tpu.memory_space<vmem>>, %arg3: memref<8x32xf32, #tpu.memory_space<vmem>>, %arg4: memref<1x1x8xf32, #tpu.memory_space<vmem>>, %arg5: memref<1x8xf32, #tpu.memory_space<vmem>>, %arg6: memref<1x8xf32, #tpu.memory_space<vmem>>, %arg7: memref<1x8xf32, #tpu.memory_space<vmem>>) attributes {dimension_semantics = [#tpu.dimension_semantics<parallel>, #tpu.dimension_semantics<arbitrary>], iteration_bounds = array<i64: 1, 1>, scalar_prefetch = 0 : i64, scratch_operands = 3 : i64, tpu.core_type = #tpu.core_type<tc>, window_params = [{transform_indices = @transform_0, window_bounds = array<i64: 8, 32>}, {transform_indices = @transform_1, window_bounds = array<i64: 8, 32>}, {transform_indices = @transform_2, window_bounds = array<i64: 1, 1, 8>}]} {
    %c0_i32 = arith.constant 0 : i32
    %0 = arith.cmpi eq, %arg1, %c0_i32 : i32
    %1 = arith.extui %0 : i1 to i32
    %c0_i32_0 = arith.constant 0 : i32
    %2 = arith.cmpi ne, %1, %c0_i32_0 : i32
    scf.if %2 {
      %cst_21 = arith.constant 0.000000e+00 : f32
      %24 = vector.broadcast %cst_21 : f32 to vector<1x8xf32>
      %c0_22 = arith.constant 0 : index
      %c0_23 = arith.constant 0 : index
      %25 = vector.load %arg5[%c0_22, %c0_23] : memref<1x8xf32, #tpu.memory_space<vmem>>, vector<1x8xf32>
      tpu.vector_store %arg5[%c0_22, %c0_23], %24 {strides = array<i32>} : memref<1x8xf32, #tpu.memory_space<vmem>>, vector<1x8xf32>,
      %cst_24 = arith.constant 0.000000e+00 : f32
      %26 = vector.broadcast %cst_24 : f32 to vector<1x8xf32>
      %c0_25 = arith.constant 0 : index
      %c0_26 = arith.constant 0 : index
      %27 = vector.load %arg6[%c0_25, %c0_26] : memref<1x8xf32, #tpu.memory_space<vmem>>, vector<1x8xf32>
      tpu.vector_store %arg6[%c0_25, %c0_26], %26 {strides = array<i32>} : memref<1x8xf32, #tpu.memory_space<vmem>>, vector<1x8xf32>,
      %cst_27 = arith.constant 0.000000e+00 : f32
      %28 = vector.broadcast %cst_27 : f32 to vector<1x8xf32>
      %c0_28 = arith.constant 0 : index
      %c0_29 = arith.constant 0 : index
      %29 = vector.load %arg7[%c0_28, %c0_29] : memref<1x8xf32, #tpu.memory_space<vmem>>, vector<1x8xf32>
      tpu.vector_store %arg7[%c0_28, %c0_29], %28 {strides = array<i32>} : memref<1x8xf32, #tpu.memory_space<vmem>>, vector<1x8xf32>,
    } else {
    }
    %c0 = arith.constant 0 : index
    %c0_1 = arith.constant 0 : index
    %3 = vector.load %arg2[%c0, %c0_1] : memref<8x32xf32, #tpu.memory_space<vmem>>, vector<8x32xf32>
    %c0_2 = arith.constant 0 : index
    %c0_3 = arith.constant 0 : index
    %4 = vector.load %arg3[%c0_2, %c0_3] : memref<8x32xf32, #tpu.memory_space<vmem>>, vector<8x32xf32>
    %cst = arith.constant 1.000000e+00 : f32
    %5 = vector.broadcast %cst : f32 to vector<1x32xf32>
    %c0_4 = arith.constant 0 : index
    %c0_5 = arith.constant 0 : index
    %6 = vector.load %arg5[%c0_4, %c0_5] : memref<1x8xf32, #tpu.memory_space<vmem>>, vector<1x8xf32>
    %7 = arith.mulf %3, %4 : vector<8x32xf32>
    %cst_6 = arith.constant dense<0.000000e+00> : vector<1x8xf32>
    %8 = tpu.matmul %5, %7, %cst_6 {dimension_numbers = #tpu.dot_dimension_numbers<[1], [1], [0], [0], [0, 0, 1, 0], [], []>, precision = #tpu.contract_precision<fp32>} : vector<1x32xf32>, vector<8x32xf32>, vector<1x8xf32> -> vector<1x8xf32>
    %9 = arith.addf %6, %8 : vector<1x8xf32>
    %c0_7 = arith.constant 0 : index
    %c0_8 = arith.constant 0 : index
    %10 = vector.load %arg5[%c0_7, %c0_8] : memref<1x8xf32, #tpu.memory_space<vmem>>, vector<1x8xf32>
    tpu.vector_store %arg5[%c0_7, %c0_8], %9 {strides = array<i32>} : memref<1x8xf32, #tpu.memory_space<vmem>>, vector<1x8xf32>,
    %c0_9 = arith.constant 0 : index
    %c0_10 = arith.constant 0 : index
    %11 = vector.load %arg6[%c0_9, %c0_10] : memref<1x8xf32, #tpu.memory_space<vmem>>, vector<1x8xf32>
    %12 = arith.mulf %3, %3 : vector<8x32xf32>
    %cst_11 = arith.constant dense<0.000000e+00> : vector<1x8xf32>
    %13 = tpu.matmul %5, %12, %cst_11 {dimension_numbers = #tpu.dot_dimension_numbers<[1], [1], [0], [0], [0, 0, 1, 0], [], []>, precision = #tpu.contract_precision<fp32>} : vector<1x32xf32>, vector<8x32xf32>, vector<1x8xf32> -> vector<1x8xf32>
    %14 = arith.addf %11, %13 : vector<1x8xf32>
    %c0_12 = arith.constant 0 : index
    %c0_13 = arith.constant 0 : index
    %15 = vector.load %arg6[%c0_12, %c0_13] : memref<1x8xf32, #tpu.memory_space<vmem>>, vector<1x8xf32>
    tpu.vector_store %arg6[%c0_12, %c0_13], %14 {strides = array<i32>} : memref<1x8xf32, #tpu.memory_space<vmem>>, vector<1x8xf32>,
    %c0_14 = arith.constant 0 : index
    %c0_15 = arith.constant 0 : index
    %16 = vector.load %arg7[%c0_14, %c0_15] : memref<1x8xf32, #tpu.memory_space<vmem>>, vector<1x8xf32>
    %17 = arith.mulf %4, %4 : vector<8x32xf32>
    %cst_16 = arith.constant dense<0.000000e+00> : vector<1x8xf32>
    %18 = tpu.matmul %5, %17, %cst_16 {dimension_numbers = #tpu.dot_dimension_numbers<[1], [1], [0], [0], [0, 0, 1, 0], [], []>, precision = #tpu.contract_precision<fp32>} : vector<1x32xf32>, vector<8x32xf32>, vector<1x8xf32> -> vector<1x8xf32>
    %19 = arith.addf %16, %18 : vector<1x8xf32>
    %c0_17 = arith.constant 0 : index
    %c0_18 = arith.constant 0 : index
    %20 = vector.load %arg7[%c0_17, %c0_18] : memref<1x8xf32, #tpu.memory_space<vmem>>, vector<1x8xf32>
    tpu.vector_store %arg7[%c0_17, %c0_18], %19 {strides = array<i32>} : memref<1x8xf32, #tpu.memory_space<vmem>>, vector<1x8xf32>,
    %c0_i32_19 = arith.constant 0 : i32
    %21 = arith.cmpi eq, %arg1, %c0_i32_19 : i32
    %22 = arith.extui %21 : i1 to i32
    %c0_i32_20 = arith.constant 0 : i32
    %23 = arith.cmpi ne, %22, %c0_i32_20 : i32
    scf.if %23 {
      %c0_21 = arith.constant 0 : index
      %c0_22 = arith.constant 0 : index
      %24 = vector.load %arg6[%c0_21, %c0_22] : memref<1x8xf32, #tpu.memory_space<vmem>>, vector<1x8xf32>
      %25 = math.sqrt %24 : vector<1x8xf32>
      %c0_23 = arith.constant 0 : index
      %c0_24 = arith.constant 0 : index
      %26 = vector.load %arg7[%c0_23, %c0_24] : memref<1x8xf32, #tpu.memory_space<vmem>>, vector<1x8xf32>
      %27 = math.sqrt %26 : vector<1x8xf32>
      %28 = arith.mulf %25, %27 : vector<1x8xf32>
      %cst_25 = arith.constant 9.99999993E-9 : f32
      %29 = vector.broadcast %cst_25 : f32 to vector<1x8xf32>
      %30 = arith.maximumf %28, %29 : vector<1x8xf32>
      %cst_26 = arith.constant 5.000000e-02 : f32
      %31 = vector.broadcast %cst_26 : f32 to vector<1x8xf32>
      %32 = arith.mulf %30, %31 : vector<1x8xf32>
      %33 = tpu.reciprocal %32 : vector<1x8xf32> -> vector<1x8xf32>
      %c0_27 = arith.constant 0 : index
      %c0_28 = arith.constant 0 : index
      %34 = vector.load %arg5[%c0_27, %c0_28] : memref<1x8xf32, #tpu.memory_space<vmem>>, vector<1x8xf32>
      %35 = arith.mulf %34, %33 : vector<1x8xf32>
      %c0_29 = arith.constant 0 : index
      %c0_30 = arith.constant 0 : index
      %c0_31 = arith.constant 0 : index
      %36 = vector.load %arg4[%c0_29, %c0_30, %c0_31] : memref<1x1x8xf32, #tpu.memory_space<vmem>>, vector<1x1x8xf32>
      %37 = vector.shape_cast %36 : vector<1x1x8xf32> to vector<1x8xf32>
      %38 = vector.shape_cast %35 : vector<1x8xf32> to vector<1x1x8xf32>
      tpu.vector_store %arg4[%c0_29, %c0_30, %c0_31], %38 {strides = array<i32>} : memref<1x1x8xf32, #tpu.memory_space<vmem>>, vector<1x1x8xf32>,
    } else {
    }
    return
  }
  func.func @transform_0(%arg0: i32, %arg1: i32) -> (i32, i32) {
    %c0_i32 = arith.constant 0 : i32
    return %arg0, %arg1 : i32, i32
  }
  func.func @transform_1(%arg0: i32, %arg1: i32) -> (i32, i32) {
    %c0_i32 = arith.constant 0 : i32
    return %arg0, %arg1 : i32, i32
  }
  func.func @transform_2(%arg0: i32, %arg1: i32) -> (i32, i32, i32) {
    %c0_i32 = arith.constant 0 : i32
    %c0_i32_0 = arith.constant 0 : i32
    %c0_i32_1 = arith.constant 0 : i32
    return %arg0, %c0_i32, %c0_i32_0 : i32, i32, i32
  }
}

</mosaic_0001>

<bundles_post_ra>
// kernel: tpu_custom_call.1
= control target key start
LH: loop header
LB: loop body
LE: loop exit
PB: predicated region body
PF: predicated region fallthrough
CT: control target
= control target key end

     0   :  { %7 = vsyncpa [#allocation6], 0  ;;  %s1834_s0 = inlined_call_operand.hbm [shape: f32[8,32], index: 0, kind: input, shape index: {}]   ;;  %s1835_s1 = inlined_call_operand.hbm [shape: f32[8,32], index: 1, kind: input, shape index: {}]   ;;  %s1836_s2 = inlined_call_operand.hbm [shape: f32[1,1,8], index: 2, kind: output, shape index: {}]  }
   0x1   :  { %8 = vsyncpa [#allocation9], 0 }
   0x2   :  { %9 = vsyncpa [#allocation7], 0  ;;  %s1672_s9 = smov [#allocation5]   ;;  %s1673_s11 = smov [#allocation8]  }
   0x3   :  { %s16_s10 = sshll.u32 %s1672_s9, 4  ;;  %s26_s12 = sshll.u32 %s1673_s11, 4  ;;  %s17_s10 = int_to_ptr.vmem [resolvable:$true] %s16_s10  ;;  %s27_s12 = int_to_ptr.vmem [resolvable:$true] %s26_s12 }
   0x4   :  { %s1600_s15 = scalar_lea.hbm %s1834_s0, 128 }
   0x5   :  { %p1601_p0 = scmp.ne.s32.totalorder %s1834_s0, %s1600_s15  ;;  %p1604_p1 = scmp.lt.u32.totalorder %s1600_s15, %s1834_s0 }
   0x7   :  { %p1606_p2 = pnand %p1604_p1, %p1601_p0 }
   0x9   :  { %1609 = shalt.err (!%p1606_p2)
}
   0xa   :  { %s1610_s20 = scalar_lea.vmem %s17_s10, 128  ;;  %p1615_p4 = scmp.lt.s32.totalorder %s17_s10, %s17_s10 }
   0xb   :  { %p1611_p3 = scmp.ne.s32.totalorder %s17_s10, %s1610_s20  ;;  %p1616_p5 = scmp.lt.s32.totalorder %s1610_s20, %s1610_s20 }
   0xd   :  { %p1617_p6 = por %p1616_p5, %p1615_p4 }
   0xf   :  { %p1618_p7 = pnand %p1617_p6, %p1611_p3 }
  0x11   :  { %1621 = shalt.err (!%p1618_p7)
}
  0x12   :  { %19 = dma.hbm_to_vmem [thread:$0]  %s1834_s0, 128, %s17_s10, [#allocation6]  }
  0x13   :  { %s1622_s25 = scalar_lea.hbm %s1835_s1, 128 }
  0x14   :  { %p1623_p8 = scmp.ne.s32.totalorder %s1835_s1, %s1622_s25  ;;  %p1626_p9 = scmp.lt.u32.totalorder %s1622_s25, %s1835_s1 }
  0x16   :  { %p1628_p10 = pnand %p1626_p9, %p1623_p8 }
  0x18   :  { %1631 = shalt.err (!%p1628_p10)
}
  0x19   :  { %s1632_s30 = scalar_lea.vmem %s27_s12, 128  ;;  %p1637_p12 = scmp.lt.s32.totalorder %s27_s12, %s27_s12 }
  0x1a   :  { %p1633_p11 = scmp.ne.s32.totalorder %s27_s12, %s1632_s30  ;;  %p1638_p13 = scmp.lt.s32.totalorder %s1632_s30, %s1632_s30 }
  0x1c   :  { %p1639_p0 = por %p1638_p13, %p1637_p12 }
  0x1e   :  { %p1640_p1 = pnand %p1639_p0, %p1633_p11 }
  0x20   :  { %1643 = shalt.err (!%p1640_p1)
}
  0x21   :  { %29 = dma.hbm_to_vmem [thread:$0]  %s1835_s1, 128, %s27_s12, [#allocation9]  }
  0x22   :  { %1666 = dma.done.wait [#allocation6], 128  }
  0x23   :  { %1667 = vsyncadd [#allocation6], 4294967168 }
  0x24   :  { %1668 = dma.done.wait [#allocation9], 128  }
  0x25   :  { %1669 = vsyncadd [#allocation9], 4294967168  ;;  %vm48_vm0 = vcmask 261120   ;;  %v1674_v0 = vmov 0.0   ;;  %v1675_v1 = vmov 0   ;;  %vm1676_vm1 = vmmov 0  }
  0x26   :  { %1497 = vmatprep.subr.mxu0 %v1674_v0  ;;  %1502 = vmatprep.subr.mxu1 %v1674_v0  ;;  %v50_v2 = vsel %vm48_vm0, 1.0, %v1675_v1  ;;  %v44_v5 = vld [vmem:[#allocation5] sm:$0xff]  ;;  %v45_v6 = vld [vmem:[#allocation8] sm:$0xff]  ;;  %v1677_v23 = vmov 1.0   ;;  %vm40_vm2 = vcmask 57344   ;;  %s1678_s1 = smov [#allocation10]  }
  0x27   :  { %1499 = vmatprep.mubr.msk.f32.mxu0 %vm1676_vm1, %v1674_v0  ;;  %v1723_v3 = vsub.f32 %v50_v2, %v50_v2  ;;  %1504 = vmatprep.mubr.msk.f32.mxu1 %vm1676_vm1, %v1674_v0  ;;  %v47_v7 = vmul.f32 %v45_v6, %v44_v5  ;;  %v505_v9 = vmul.f32 %v44_v5, %v44_v5  ;;  %s1442_s4 = sshll.u32 %s1678_s1, 4  ;;  %s1443_s4 = int_to_ptr.vmem [resolvable:$true] %s1442_s4 }
  0x28   :  { %v958_v19 = vmul.f32 %v45_v6, %v45_v6  ;;  %41 = vst.msk [vmem:[#allocation2] sm:$0x1] %vm40_vm2, %v1674_v0  ;;  %42 = vst.msk [vmem:[#allocation3] sm:$0x1] %vm40_vm2, %v1674_v0  ;;  %s1644_s5 = scalar_lea.vmem %s1443_s4, 16  ;;  %s1648_s6 = scalar_lea.vmem %s1443_s4, 32 }
  0x29   :  { %v1728_v4 = vand.u32 4294901760, %v1723_v3  ;;  %v53_v10 = vsel %vm48_vm0, %v47_v7, 0  ;;  %v507_v11 = vsel %vm48_vm0, %v505_v9, 0  ;;  %43 = vst.msk [vmem:[#allocation4] sm:$0x1] %vm40_vm2, %v1674_v0  ;;  %p1645_p2 = scmp.ne.s32.totalorder %s1443_s4, %s1644_s5  ;;  %p1649_p3 = scmp.lt.s32.totalorder %s1443_s4, %s1443_s4 }
  0x2a   :  { %v56_v12 = vand.u32 4294901760, %v53_v10  ;;  %v510_v15 = vand.u32 4294901760, %v507_v11  ;;  %v960_v22 = vsel %vm48_vm0, %v958_v19, 0  ;;  %p1650_p4 = scmp.lt.s32.totalorder %s1648_s6, %s1644_s5 }
  0x2b   :  { %v124_v8 = vsub.f32 %v1723_v3, %v1728_v4  ;;  %v963_v25 = vand.u32 4294901760, %v960_v22 }
  0x2c   :  { %1498 = vmatpush3.xpose.msra.mxu0 %v56_v12  ;;  %v133_v14 = vsub.f32 %v53_v10, %v56_v12  ;;  %v587_v18 = vsub.f32 %v507_v11, %v510_v15  ;;  %p1651_p5 = por %p1650_p4, %p1649_p3 }
  0x2d   :  { %v1734_v13 = vand.u32 4294901760, %v124_v8  ;;  %1507 = vmatprep.subr.mxu0 %v1674_v0  ;;  %v1040_v27 = vsub.f32 %v960_v22, %v963_v25 }
  0x2e   :  { %v134_v16 = vand.u32 4294901760, %v133_v14  ;;  %v588_v21 = vand.u32 4294901760, %v587_v18  ;;  %p1652_p6 = pnand %p1651_p5, %p1645_p2 }
  0x2f   :  { %1500 = vmatmul.mubr.f32.vlgmr.msra.gmra.mrb[0].mxu0 %v1734_v13  ;;  %v1041_v28 = vand.u32 4294901760, %v1040_v27  ;;  %v46_v47 = vld [vmem:[#allocation2] sm:$0x1]  ;;  %v504_v2 = vld [vmem:[#allocation3] sm:$0x1] }
  0x30   :  { %v135_v17 = vsub.f32 %v133_v14, %v134_v16  ;;  %1508 = vmatpush3.xpose.msra.mxu0 %v133_v14  ;;  %1509 = vmatprep.mubr.msk.f32.mxu0 %vm1676_vm1, %v1674_v0  ;;  %v589_v24 = vsub.f32 %v587_v18, %v588_v21  ;;  %v957_v19 = vld [vmem:[#allocation4] sm:$0x1] }
  0x31   :  { %1517 = vmatprep.subr.mxu0 %v1674_v0  ;;  %v1042_v29 = vsub.f32 %v1040_v27, %v1041_v28 }
  0x32   :  { %v136_v20 = vand.u32 4294901760, %v135_v17  ;;  %v590_v26 = vand.u32 4294901760, %v589_v24 }
  0x33   :  { %1510 = vmatmul.mubr.f32.vlgmr.msra.gmra.mrb[2].mxu0 %v1723_v3  ;;  %v1043_v30 = vand.u32 4294901760, %v1042_v29 }
  0x34   :  { %1503 = vmatpush3.xpose.msra.mxu1 %v136_v20  ;;  %1518 = vmatpush3.xpose.msra.mxu0 %v134_v16 }
  0x35   :  { %1512 = vmatprep.subr.mxu1 %v1674_v0  ;;  %1519 = vmatprep.mubr.msk.f32.mxu0 %vm1676_vm1, %v1674_v0 }
  0x36   :  { %1527 = vmatprep.subr.mxu0 %v1674_v0 }
  0x37   :  { %1505 = vmatmul.mubr.msk.f32.vlgmr.msra.gmra.mrb[0].mxu1 %vm48_vm0, %v1677_v23  ;;  %1520 = vmatmul.mubr.msk.f32.vlgmr.msra.gmra.mrb[4].mxu0 %vm48_vm0, %v1677_v23 }
  0x38   :  { %1513 = vmatpush3.xpose.msra.mxu1 %v56_v12  ;;  %1514 = vmatprep.mubr.msk.f32.mxu1 %vm1676_vm1, %v1674_v0 }
  0x39   :  { %1522 = vmatprep.subr.mxu1 %v1674_v0  ;;  %1528 = vmatpush3.xpose.msra.mxu0 %v510_v15 }
  0x3a   :  { %1529 = vmatprep.mubr.msk.f32.mxu0 %vm1676_vm1, %v1674_v0  ;;  %1537 = vmatprep.subr.mxu0 %v1674_v0 }
  0x3b   :  { %1515 = vmatmul.mubr.f32.vlgmr.msra.gmra.mrb[2].mxu1 %v1728_v4 }
  0x3c   :  { %1523 = vmatpush3.xpose.msra.mxu1 %v56_v12  ;;  %1524 = vmatprep.mubr.msk.f32.mxu1 %vm1676_vm1, %v1674_v0 }
  0x3d   :  { %1532 = vmatprep.subr.mxu1 %v1674_v0  ;;  %1530 = vmatmul.mubr.f32.vlgmr.msra.gmra.mrb[6].mxu0 %v1734_v13 }
  0x3e   :  { %1538 = vmatpush3.xpose.msra.mxu0 %v587_v18  ;;  %1539 = vmatprep.mubr.msk.f32.mxu0 %vm1676_vm1, %v1674_v0 }
  0x3f   :  { %1525 = vmatmul.mubr.msk.f32.vlgmr.msra.gmra.mrb[4].mxu1 %vm48_vm0, %v1677_v23  ;;  %1547 = vmatprep.subr.mxu0 %v1674_v0 }
  0x40   :  { %1533 = vmatpush3.xpose.msra.mxu1 %v590_v26  ;;  %1534 = vmatprep.mubr.msk.f32.mxu1 %vm1676_vm1, %v1674_v0 }
  0x41   :  { %1542 = vmatprep.subr.mxu1 %v1674_v0  ;;  %1540 = vmatmul.mubr.f32.vlgmr.msra.gmra.mrb[8].mxu0 %v1723_v3 }
  0x42   :  { %1548 = vmatpush3.xpose.msra.mxu0 %v588_v21  ;;  %1549 = vmatprep.mubr.msk.f32.mxu0 %vm1676_vm1, %v1674_v0 }
  0x43   :  { %1535 = vmatmul.mubr.msk.f32.vlgmr.msra.gmra.mrb[6].mxu1 %vm48_vm0, %v1677_v23  ;;  %1557 = vmatprep.subr.mxu0 %v1674_v0 }
  0x44   :  { %1543 = vmatpush3.xpose.msra.mxu1 %v510_v15  ;;  %1544 = vmatprep.mubr.msk.f32.mxu1 %vm1676_vm1, %v1674_v0 }
  0x45   :  { %1552 = vmatprep.subr.mxu1 %v1674_v0  ;;  %1550 = vmatmul.mubr.msk.f32.vlgmr.msra.gmra.mrb[10].mxu0 %vm48_vm0, %v1677_v23 }
  0x46   :  { %1558 = vmatpush3.xpose.msra.mxu0 %v963_v25  ;;  %1559 = vmatprep.mubr.msk.f32.mxu0 %vm1676_vm1, %v1674_v0 }
  0x47   :  { %1545 = vmatmul.mubr.f32.vlgmr.msra.gmra.mrb[8].mxu1 %v1728_v4  ;;  %1567 = vmatprep.subr.mxu0 %v1674_v0 }
  0x48   :  { %1553 = vmatpush3.xpose.msra.mxu1 %v510_v15  ;;  %1554 = vmatprep.mubr.msk.f32.mxu1 %vm1676_vm1, %v1674_v0 }
  0x49   :  { %1562 = vmatprep.subr.mxu1 %v1674_v0  ;;  %1560 = vmatmul.mubr.f32.vlgmr.msra.gmra.mrb[12].mxu0 %v1734_v13 }
  0x4a   :  { %1568 = vmatpush3.xpose.msra.mxu0 %v1040_v27  ;;  %1569 = vmatprep.mubr.msk.f32.mxu0 %vm1676_vm1, %v1674_v0 }
  0x4b   :  { %1555 = vmatmul.mubr.msk.f32.vlgmr.msra.gmra.mrb[10].mxu1 %vm48_vm0, %v1677_v23  ;;  %1577 = vmatprep.subr.mxu0 %v1674_v0 }
  0x4c   :  { %1563 = vmatpush3.xpose.msra.mxu1 %v1043_v30  ;;  %1564 = vmatprep.mubr.msk.f32.mxu1 %vm1676_vm1, %v1674_v0 }
  0x4d   :  { %1572 = vmatprep.subr.mxu1 %v1674_v0  ;;  %1570 = vmatmul.mubr.f32.vlgmr.msra.gmra.mrb[14].mxu0 %v1723_v3 }
  0x4e   :  { %1578 = vmatpush3.xpose.msra.mxu0 %v1041_v28  ;;  %1579 = vmatprep.mubr.msk.f32.mxu0 %vm1676_vm1, %v1674_v0 }
  0x4f   :  { %1565 = vmatmul.mubr.msk.f32.vlgmr.msra.gmra.mrb[12].mxu1 %vm48_vm0, %v1677_v23 }
  0x50   :  { %1573 = vmatpush3.xpose.msra.mxu1 %v963_v25  ;;  %1574 = vmatprep.mubr.msk.f32.mxu1 %vm1676_vm1, %v1674_v0 }
  0x51   :  { %1582 = vmatprep.subr.mxu1 %v1674_v0  ;;  %1580 = vmatmul.mubr.msk.f32.vlgmr.msra.gmra.mrb[16].mxu0 %vm48_vm0, %v1677_v23 }
  0x53   :  { %1575 = vmatmul.mubr.f32.vlgmr.msra.gmra.mrb[14].mxu1 %v1728_v4 }
  0x54   :  { %1583 = vmatpush3.xpose.msra.mxu1 %v963_v25  ;;  %1584 = vmatprep.mubr.msk.f32.mxu1 %vm1676_vm1, %v1674_v0 }
  0x57   :  { %1585 = vmatmul.mubr.msk.f32.vlgmr.msra.gmra.mrb[16].mxu1 %vm48_vm0, %v1677_v23 }
 0x102   :  { %v127_v31 = vpop.f32.mrb[0].mxu0 }
 0x103   :  { %v1501_v32 = vpop.f32.mrb[1].mxu0 }
 0x106   :  { %v277_v33 = vpop.f32.mrb[2].mxu0 }
 0x107   :  { %v1511_v34 = vpop.f32.mrb[3].mxu0 }
 0x10a   :  { %v203_v35 = vpop.f32.mrb[0].mxu1  ;;  %v425_v36 = vpop.f32.mrb[4].mxu0 }
 0x10b   :  { %v204_v37 = vadd.f32 %v203_v35, %v127_v31  ;;  %v1506_v38 = vpop.f32.mrb[1].mxu1  ;;  %v1521_v39 = vpop.f32.mrb[5].mxu0 }
 0x10d   :  { %v278_v40 = vadd.f32 %v277_v33, %v204_v37 }
 0x10e   :  { %v351_v41 = vpop.f32.mrb[2].mxu1 }
 0x10f   :  { %v352_v42 = vadd.f32 %v351_v41, %v278_v40  ;;  %v1516_v43 = vpop.f32.mrb[3].mxu1 }
 0x110   :  { %v581_v44 = vpop.f32.mrb[6].mxu0 }
 0x111   :  { %v426_v45 = vadd.f32 %v425_v36, %v352_v42  ;;  %v1531_v46 = vpop.f32.mrb[7].mxu0 }
 0x112   :  { %v497_v48 = vpop.f32.mrb[4].mxu1 }
 0x113   :  { %v498_v49 = vadd.f32 %v497_v48, %v426_v45  ;;  %v1526_v50 = vpop.f32.mrb[5].mxu1 }
 0x114   :  { %v731_v51 = vpop.f32.mrb[8].mxu0 }
 0x115   :  { %v501_v52 = vadd.f32 %v498_v49, %v46_v47  ;;  %v1541_v53 = vpop.f32.mrb[9].mxu0 }
 0x116   :  { %v657_v54 = vpop.f32.mrb[6].mxu1 }
 0x117   :  { %503 = vst.msk [vmem:[#allocation2] sm:$0x1] %vm40_vm2, %v501_v52  ;;  %v658_v55 = vadd.f32 %v657_v54, %v581_v44  ;;  %v1536_v56 = vpop.f32.mrb[7].mxu1 }
 0x118   :  { %v879_v57 = vpop.f32.mrb[10].mxu0 }
 0x119   :  { %v732_v58 = vadd.f32 %v731_v51, %v658_v55  ;;  %v1551_v59 = vpop.f32.mrb[11].mxu0 }
 0x11a   :  { %v805_v60 = vpop.f32.mrb[8].mxu1 }
 0x11b   :  { %v806_v61 = vadd.f32 %v805_v60, %v732_v58  ;;  %v1546_v62 = vpop.f32.mrb[9].mxu1 }
 0x11c   :  { %v1034_v63 = vpop.f32.mrb[12].mxu0 }
 0x11d   :  { %v880_v0 = vadd.f32 %v879_v57, %v806_v61  ;;  %v1561_v1 = vpop.f32.mrb[13].mxu0 }
 0x11e   :  { %v951_v3 = vpop.f32.mrb[10].mxu1  ;;  %v1433_v40 = vld [vmem:[#allocation2] sm:$0x1] }
 0x11f   :  { %v952_v4 = vadd.f32 %v951_v3, %v880_v0  ;;  %v1556_v5 = vpop.f32.mrb[11].mxu1 }
 0x120   :  { %v1184_v6 = vpop.f32.mrb[14].mxu0 }
 0x121   :  { %v955_v7 = vadd.f32 %v952_v4, %v504_v2  ;;  %v1571_v8 = vpop.f32.mrb[15].mxu0 }
 0x122   :  { %v1110_v9 = vpop.f32.mrb[12].mxu1 }
 0x123   :  { %956 = vst.msk [vmem:[#allocation3] sm:$0x1] %vm40_vm2, %v955_v7  ;;  %v1111_v10 = vadd.f32 %v1110_v9, %v1034_v63  ;;  %v1566_v11 = vpop.f32.mrb[13].mxu1 }
 0x124   :  { %v1332_v12 = vpop.f32.mrb[16].mxu0 }
 0x125   :  { %v1185_v13 = vadd.f32 %v1184_v6, %v1111_v10  ;;  %v1581_v14 = vpop.f32.mrb[17].mxu0 }
 0x126   :  { %v1258_v15 = vpop.f32.mrb[14].mxu1 }
 0x127   :  { %v1259_v16 = vadd.f32 %v1258_v15, %v1185_v13  ;;  %v1576_v17 = vpop.f32.mrb[15].mxu1 }
 0x129   :  { %v1333_v18 = vadd.f32 %v1332_v12, %v1259_v16 }
 0x12a   :  { %v1404_v20 = vpop.f32.mrb[16].mxu1  ;;  %v1413_v24 = vld [vmem:[#allocation3] sm:$0x1] }
 0x12b   :  { %v1405_v21 = vadd.f32 %v1404_v20, %v1333_v18  ;;  %v1586_v22 = vpop.f32.mrb[17].mxu1  ;;  %1594 = vrsqrt.f32 %v1413_v24  ;;  %vm1416_vm3 = vcmp.eq.f32.partialorder %v1413_v24, inf  ;;  %v1419_v31 = vand.u32 2147483648, %v1413_v24 }
 0x12c   :  { %vm1418_vm5 = vcmp.eq.f32.partialorder %v1413_v24, 0.0 }
 0x12d   :  { %v1408_v23 = vadd.f32 %v1405_v21, %v957_v19 }
 0x12f   :  { %1409 = vst.msk [vmem:[#allocation4] sm:$0x1] %vm40_vm2, %v1408_v23 }
 0x135   :  { %v1595_v26 = vpop.eup %1594 }
 0x136   :  { %v1421_v25 = vld [vmem:[#allocation4] sm:$0x1]  ;;  %v1415_v27 = vmul.f32 %v1595_v26, %v1413_v24 }
 0x137   :  { %1596 = vrsqrt.f32 %v1421_v25  ;;  %vm1424_vm4 = vcmp.eq.f32.partialorder %v1421_v25, inf  ;;  %v1427_v32 = vand.u32 2147483648, %v1421_v25  ;;  %vm1426_vm6 = vcmp.eq.f32.partialorder %v1421_v25, 0.0 }
 0x138   :  { %v1417_v29 = vsel %vm1416_vm3, %v1413_v24, %v1415_v27 }
 0x139   :  { %v1420_v34 = vsel %vm1418_vm5, %v1419_v31, %v1417_v29 }
 0x141   :  { %v1597_v28 = vpop.eup %1596 }
 0x142   :  { %v1423_v30 = vmul.f32 %v1597_v28, %v1421_v25 }
 0x144   :  { %v1425_v33 = vsel %vm1424_vm4, %v1421_v25, %v1423_v30 }
 0x145   :  { %v1428_v35 = vsel %vm1426_vm6, %v1427_v32, %v1425_v33 }
 0x146   :  { %v1429_v36 = vmul.f32 %v1428_v35, %v1420_v34 }
 0x148   :  { %v1430_v37 = vmax.f32 %v1429_v36, 1e-08 }
 0x14a   :  { %v1431_v38 = vmul.f32 0.05, %v1430_v37 }
 0x14c   :  { %1598 = vrcp.f32 %v1431_v38 }
 0x156   :  { %v1599_v39 = vpop.eup %1598 }
 0x157   :  { %v1434_v41 = vmul.f32 %v1599_v39, %v1433_v40 }
 0x159   :  { %1435 = vst.msk [vmem:[#allocation10] sm:$0x1] %vm40_vm2, %v1434_v41 }
 0x15a   :  { %1655 = shalt.err (!%p1652_p6)
}
 0x15b   :  { %s1656_s9 = scalar_lea.hbm %s1836_s2, 16 }
 0x15c   :  { %p1657_p7 = scmp.ne.s32.totalorder %s1836_s2, %s1656_s9  ;;  %p1660_p8 = scmp.lt.u32.totalorder %s1656_s9, %s1836_s2 }
 0x15e   :  { %p1662_p9 = pnand %p1660_p8, %p1657_p7 }
 0x160   :  { %1665 = shalt.err (!%p1662_p9)
}
 0x161   :  { %1445 = dma.vmem_to_hbm [thread:$0]  %s1443_s4, 16, %s1836_s2, [#allocation7]  }
 0x162   :  { %1670 = dma.done.wait [#allocation7], 16  }
 0x163   :  { %1671 = vsyncadd [#allocation7], 4294967280 }
 0x164   :  { %1449 = vsyncpa [#allocation6], 1 }
 0x165   :  { %1450 = vsyncpa [#allocation9], 1 }
 0x166   :  { %1451 = vsyncpa [#allocation7], 1 }

</bundles_post_ra>
